<compile_context>
chip_gen: v6e
topology: v6e:2x2x1
jax: 0.10.0
libtpu: 0.0.40
codegen_flags: <defaults>
</compile_context>

<pallas_src>
import numpy as np
import jax
import jax.numpy as jnp
from jax.experimental import pallas as pl
from jax.experimental.pallas import tpu as pltpu

_LANE = 128


def _moving_avg_kernel(a_ref, x_ref, o_ref):
    # a_ref: (l_out, L) f32 averaging matrix (VMEM-resident across grid steps)
    # x_ref: (L, tN)    lane tile of the (time, batch*channel) input slab
    # o_ref: (l_out, tN)
    o_ref[...] = jnp.dot(
        a_ref[...],
        x_ref[...].astype(jnp.float32),
        preferred_element_type=jnp.float32,
    ).astype(o_ref.dtype)


def _build_avg_matrix(L, kernel_size, stride):
    """Banded matrix A with out = A @ x replicating AvgPool1d over the
    edge-replication-padded series (padding, 1/K scale and stride fused)."""
    pad = (kernel_size - 1) // 2
    l_out = (L + 2 * pad - kernel_size) // stride + 1
    # out[t] = (1/K) * sum_k x[clip(t*stride + k - pad, 0, L-1)]
    idx = np.clip(
        np.arange(l_out)[:, None] * stride + np.arange(kernel_size)[None, :] - pad,
        0, L - 1,
    )
    A = np.zeros((l_out, L), np.float32)
    rows = np.broadcast_to(np.arange(l_out)[:, None], idx.shape).ravel()
    np.add.at(A, (rows, idx.ravel()), np.float32(1.0 / kernel_size))
    return A, l_out


def moving_avg(x, kernel_size, stride):
    """x: (B, L, C) -> (B, L_out, C), matching the PyTorch moving_avg module."""
    B, L, C = x.shape
    A_np, l_out = _build_avg_matrix(L, kernel_size, stride)
    A = jnp.asarray(A_np)

    # Lane-dense layout: (B, L, C) -> (L, B*C); lanes padded to a multiple of 128.
    # TODO(synk): these transposes are layout plumbing; if the surrounding model
    # keeps activations in (time, batch*channel) layout they disappear entirely.
    N = B * C
    xt = jnp.transpose(x, (1, 0, 2)).reshape(L, N)
    Np = ((N + _LANE - 1) // _LANE) * _LANE
    if Np != N:
        xt = jnp.pad(xt, ((0, 0), (0, Np - N)))

    itemsize = x.dtype.itemsize
    # Lane-tile size: ~4 MiB input block, multiple of 128, exact divisor of Np.
    target_tn = max(_LANE, min(2048, ((4 << 20) // max(1, L * itemsize)) // _LANE * _LANE))
    m = Np // _LANE
    d_best = 1
    for d in range(1, m + 1):
        if m % d == 0 and _LANE * d <= target_tn:
            d_best = d
    tN = _LANE * d_best
    n_tiles = Np // tN

    # VMEM budget (double-buffered blocks); raise the scoped limit only if needed.
    a_bytes = l_out * L * 4
    need = 2 * a_bytes + 2 * L * tN * itemsize + 2 * l_out * tN * max(itemsize, 4)
    cp_kwargs = dict(dimension_semantics=("parallel",))
    if need > (24 << 20):
        # TODO(synk): very long sequences (where the (l_out, L) averaging matrix
        # no longer fits VMEM) need a banded / halo time-tiled variant.
        cp_kwargs["vmem_limit_bytes"] = int(min(2 * need, 100 << 20))

    out_t = pl.pallas_call(
        _moving_avg_kernel,
        out_shape=jax.ShapeDtypeStruct((l_out, Np), x.dtype),
        grid_spec=pltpu.PrefetchScalarGridSpec(
            num_scalar_prefetch=0,
            grid=(n_tiles,),
            in_specs=[
                pl.BlockSpec((l_out, L), lambda j: (0, 0)),  # A: resident
                pl.BlockSpec((L, tN), lambda j: (0, j)),     # x lane tile
            ],
            out_specs=pl.BlockSpec((l_out, tN), lambda j: (0, j)),
        ),
        compiler_params=pltpu.CompilerParams(**cp_kwargs),
    )(A, xt)

    # Back to (B, L_out, C).
    return out_t[:, :N].reshape(l_out, B, C).transpose(1, 0, 2)


def _reference_moving_avg(x, kernel_size, stride):
    """Pure-JAX reference mirroring the PyTorch module."""
    pad = (kernel_size - 1) // 2
    front = jnp.repeat(x[:, 0:1, :], pad, axis=1)
    end = jnp.repeat(x[:, -1:, :], pad, axis=1)
    xp = jnp.concatenate([front, x, end], axis=1)
    Lp = xp.shape[1]
    l_out = (Lp - kernel_size) // stride + 1
    windows = jnp.stack(
        [xp[:, t * stride : t * stride + kernel_size, :] for t in range(l_out)],
        axis=1,
    )  # (B, L_out, kernel_size, C)
    return jnp.mean(windows, axis=2)


if __name__ == "__main__":
    key = jax.random.PRNGKey(0)
    B, L, C = 2, 16, 32
    x = jax.random.normal(key, (B, L, C), dtype=jnp.float32)

    for kernel_size, stride in [(5, 1), (4, 2)]:
        out = jax.block_until_ready(moving_avg(x, kernel_size, stride))
        ref = _reference_moving_avg(x, kernel_size, stride)
        assert out.shape == ref.shape, (out.shape, ref.shape)
        assert jnp.allclose(out, ref, atol=1e-5, rtol=1e-5), float(
            jnp.max(jnp.abs(out - ref))
        )

    print("KERNEL_OK")
</pallas_src>

<mosaic_0001>
module attributes {stable_mosaic.version = 11 : i64} {
  func.func @_moving_avg_kernel(%arg0: i32, %arg1: memref<16x16xf32, #tpu.memory_space<vmem>>, %arg2: memref<16x128xf32, #tpu.memory_space<vmem>>, %arg3: memref<16x128xf32, #tpu.memory_space<vmem>>) attributes {dimension_semantics = [#tpu.dimension_semantics<parallel>], iteration_bounds = array<i64: 1>, scalar_prefetch = 0 : i64, scratch_operands = 0 : i64, tpu.core_type = #tpu.core_type<tc>, window_params = [{pipeline_mode = #tpu.pipeline_mode<synchronous>, transform_indices = @transform_0, window_bounds = array<i64: 16, 16>}, {transform_indices = @transform_1, window_bounds = array<i64: 16, 128>}, {transform_indices = @transform_2, window_bounds = array<i64: 16, 128>}]} {
    %c0 = arith.constant 0 : index
    %c0_0 = arith.constant 0 : index
    %0 = vector.load %arg1[%c0, %c0_0] : memref<16x16xf32, #tpu.memory_space<vmem>>, vector<16x16xf32>
    %c0_1 = arith.constant 0 : index
    %c0_2 = arith.constant 0 : index
    %1 = vector.load %arg2[%c0_1, %c0_2] : memref<16x128xf32, #tpu.memory_space<vmem>>, vector<16x128xf32>
    %cst = arith.constant dense<0.000000e+00> : vector<16x128xf32>
    %2 = tpu.matmul %0, %1, %cst {dimension_numbers = #tpu.dot_dimension_numbers<[1], [0], [0], [1], [0, 0, 1, 1], [], []>} : vector<16x16xf32>, vector<16x128xf32>, vector<16x128xf32> -> vector<16x128xf32>
    %c0_3 = arith.constant 0 : index
    %c0_4 = arith.constant 0 : index
    %3 = vector.load %arg3[%c0_3, %c0_4] : memref<16x128xf32, #tpu.memory_space<vmem>>, vector<16x128xf32>
    tpu.vector_store %arg3[%c0_3, %c0_4], %2 {strides = array<i32>} : memref<16x128xf32, #tpu.memory_space<vmem>>, vector<16x128xf32>,
    return
  }
  func.func @transform_0(%arg0: i32) -> (i32, i32) {
    %c0_i32 = arith.constant 0 : i32
    %c0_i32_0 = arith.constant 0 : i32
    %c0_i32_1 = arith.constant 0 : i32
    return %c0_i32, %c0_i32_0 : i32, i32
  }
  func.func @transform_1(%arg0: i32) -> (i32, i32) {
    %c0_i32 = arith.constant 0 : i32
    %c0_i32_0 = arith.constant 0 : i32
    return %c0_i32, %arg0 : i32, i32
  }
  func.func @transform_2(%arg0: i32) -> (i32, i32) {
    %c0_i32 = arith.constant 0 : i32
    %c0_i32_0 = arith.constant 0 : i32
    return %c0_i32, %arg0 : i32, i32
  }
}

</mosaic_0001>

<bundles_post_ra>
// kernel: tpu_custom_call.1
= control target key start
LH: loop header
LB: loop body
LE: loop exit
PB: predicated region body
PF: predicated region fallthrough
CT: control target
= control target key end

     0   :  { %7 = vsyncpa [#allocation3], 0  ;;  %s268_s0 = inlined_call_operand.hbm [shape: f32[16,16], index: 0, kind: input, shape index: {}]   ;;  %s269_s1 = inlined_call_operand.hbm [shape: f32[16,128], index: 1, kind: input, shape index: {}]   ;;  %s270_s2 = inlined_call_operand.hbm [shape: f32[16,128], index: 2, kind: output, shape index: {}]  }
   0x1   :  { %8 = vsyncpa [#allocation6], 0 }
   0x2   :  { %9 = vsyncpa [#allocation4], 0  ;;  %s230_s9 = smov [#allocation2]  }
   0x3   :  { %s15_s10 = sshll.u32 %s230_s9, 4  ;;  %s16_s10 = int_to_ptr.vmem [resolvable:$true] %s15_s10 }
   0x4   :  { %s172_s11 = scalar_lea.vmem %s16_s10, 256  ;;  %p177_p1 = scmp.lt.s32.totalorder %s16_s10, %s16_s10 }
   0x5   :  { %p173_p0 = scmp.ne.s32.totalorder %s16_s10, %s172_s11  ;;  %p178_p2 = scmp.lt.s32.totalorder %s172_s11, %s172_s11 }
   0x7   :  { %p179_p3 = por %p178_p2, %p177_p1 }
   0x9   :  { %p180_p4 = pnand %p179_p3, %p173_p0 }
   0xb   :  { %183 = shalt.err (!%p180_p4)
}
   0xc   :  { %s231_s12 = smov 128   ;;  %s232_s13 = smov 8  }
   0xd   :  { %21 = dma.hbm_to_vmem [thread:$0]  %s268_s0, 256, %s16_s10, [#allocation3], %s231_s12, %s231_s12, %s232_s13  }
   0xe   :  { %s233_s16 = smov [#allocation5]  }
   0xf   :  { %s27_s17 = sshll.u32 %s233_s16, 4  ;;  %s28_s17 = int_to_ptr.vmem [resolvable:$true] %s27_s17 }
  0x10   :  { %s192_s18 = scalar_lea.vmem %s28_s17, 256  ;;  %p197_p6 = scmp.lt.s32.totalorder %s28_s17, %s28_s17 }
  0x11   :  { %p193_p5 = scmp.ne.s32.totalorder %s28_s17, %s192_s18  ;;  %p198_p7 = scmp.lt.s32.totalorder %s192_s18, %s192_s18 }
  0x13   :  { %p199_p8 = por %p198_p7, %p197_p6 }
  0x15   :  { %p200_p9 = pnand %p199_p8, %p193_p5 }
  0x17   :  { %203 = shalt.err (!%p200_p9)
}
  0x18   :  { %33 = dma.hbm_to_vmem [thread:$0]  %s269_s1, 256, %s28_s17, [#allocation6], %s231_s12, %s231_s12, %s232_s13  }
  0x19   :  { %224 = dma.done.wait [#allocation3], 256  }
  0x1a   :  { %225 = vsyncadd [#allocation3], 4294967040 }
  0x1b   :  { %226 = dma.done.wait [#allocation6], 256  }
  0x1c   :  { %227 = vsyncadd [#allocation6], 4294967040  ;;  %vm44_vm0 = vcmask 130048   ;;  %v43_v0 = vld [vmem:[#allocation5 + $0x8] sm:$0xff]  ;;  %v42_v1 = vld [vmem:[#allocation5] sm:$0xff]  ;;  %s234_s0 = smov [#allocation7]  }
  0x1d   :  { %v40_v2 = vld [vmem:[#allocation2] sm:$0xff]  ;;  %152 = vmatprep.subr.mxu0 %v43_v0  ;;  %v41_v3 = vld [vmem:[#allocation2 + $0x8] sm:$0xff]  ;;  %s133_s21 = sshll.u32 %s234_s0, 4  ;;  %s134_s21 = int_to_ptr.vmem [resolvable:$true] %s133_s21 }
  0x1e   :  { %156 = vmatprep.mubr.msk.f32.mxu0 %vm44_vm0, %v40_v2  ;;  %153 = vmatpush3.msra.mxu0 %v43_v0  ;;  %s204_s1 = scalar_lea.vmem %s134_s21, 256  ;;  %p209_p11 = scmp.lt.s32.totalorder %s134_s21, %s134_s21 }
  0x1f   :  { %154 = vmatprep.subr.mxu0 %v42_v1  ;;  %p205_p10 = scmp.ne.s32.totalorder %s134_s21, %s204_s1  ;;  %p210_p12 = scmp.lt.s32.totalorder %s204_s1, %s204_s1 }
  0x20   :  { %155 = vmatpush3.msra.mxu0 %v42_v1 }
  0x21   :  { %157 = vmatmul.mubr.msk.f32.vlgmr.msra.gmra.mxu0 %vm44_vm0, %v41_v3  ;;  %p211_p13 = por %p210_p12, %p209_p11 }
  0x23   :  { %p212_p0 = pnand %p211_p13, %p205_p10 }
  0xe1   :  { %v158_v4 = vpop.f32.mrf.mxu0 }
  0xe2   :  { %127 = vst [vmem:[#allocation7 + $0x8] sm:$0xff] %v158_v4 }
  0xe3   :  { %v117_v5 = vpop.f32.mrf.mxu0 }
  0xe4   :  { %126 = vst [vmem:[#allocation7] sm:$0xff] %v117_v5 }
  0xe5   :  { %215 = shalt.err (!%p212_p0)
}
  0xe6   :  { %139 = dma.vmem_to_hbm [thread:$0]  %s134_s21, 256, %s270_s2, [#allocation4], %s231_s12, %s231_s12, %s232_s13  }
  0xe7   :  { %228 = dma.done.wait [#allocation4], 256  }
  0xe8   :  { %229 = vsyncadd [#allocation4], 4294967040 }
  0xe9   :  { %143 = vsyncpa [#allocation3], 1 }
  0xea   :  { %144 = vsyncpa [#allocation6], 1 }
  0xeb   :  { %145 = vsyncpa [#allocation4], 1 }

</bundles_post_ra>
